<compile_context>
chip_gen: v7x
topology: tpu7x:2x2x1
jax: 0.10.0
libtpu: 0.0.40
codegen_flags: <defaults>
</compile_context>

<pallas_src>
import functools

import jax
import jax.numpy as jnp
from jax.experimental import pallas as pl
from jax.experimental.pallas import tpu as pltpu


# ----------------------------------------------------------------------------
# tiling / sizing helpers
# ----------------------------------------------------------------------------
def _sublane_align(dtype) -> int:
    """Minimum sublane tile for this dtype (8 for 4-byte, 16 for 2-byte, ...)."""
    return max(8, 32 // jnp.dtype(dtype).itemsize)


def _pick_tile(full: int, want: int, align: int) -> int:
    """Largest tile <= want that divides `full` and is a multiple of `align`.
    Falls back to the full extent (always legal: block == full array dim)."""
    if full <= want:
        return full
    t = (want // align) * align
    while t >= align:
        if full % t == 0:
            return t
        t -= align
    return full


def _choose_tile_m(T: int, dtype, tile_m: int) -> int:
    """Row tile for the projection kernels, clamped to T//2 so the 'parallel'
    grid axis has extent >= 2 (keeps both v7x TensorCores busy)."""
    align = _sublane_align(dtype)
    half = (T // 2) // align * align
    want = min(tile_m, half) if half >= align else tile_m
    return _pick_tile(T, want, align)


def _vmem_limit_bytes(est: int) -> int:
    """Generation-aware VMEM request: generous multiple of the estimate,
    capped at 90% of this chip's per-core VMEM capacity."""
    try:
        cap = pltpu.get_tpu_info().vmem_capacity_bytes
    except Exception:  # pragma: no cover - conservative fallback (v7x: 64 MiB)
        cap = 64 * 2**20
    return int(min(max(2 * est, 32 * 2**20), int(cap * 0.9)))


# ----------------------------------------------------------------------------
# kernel 1: fused QKV projection, emits q / k / v as separate [T, H] outputs
#   grid = (T // tm,); W^T slabs are VMEM-resident (constant index_map), one
#   full-K matmul per M tile, bias folded in the epilogue.
# ----------------------------------------------------------------------------
def _qkv_kernel(x_ref, wq_ref, wk_ref, wv_ref, bq_ref, bk_ref, bv_ref,
                q_ref, k_ref, v_ref):
    x = x_ref[...]                                   # native dtype to the MXU

    def proj(w_ref, b_ref, o_ref):
        y = jnp.dot(x, w_ref[...], preferred_element_type=jnp.float32)
        o_ref[...] = (y + b_ref[...].astype(jnp.float32)).astype(o_ref.dtype)

    proj(wq_ref, bq_ref, q_ref)
    proj(wk_ref, bk_ref, k_ref)
    proj(wv_ref, bv_ref, v_ref)


def qkv_projection(x, qkv_w, qkv_b, *, hidden_size: int, tile_m: int = 512):
    """x: [T, K]; qkv_w: [3H, K] (torch layout); qkv_b: [3H] -> (q, k, v) [T, H]."""
    T, K = x.shape
    H = hidden_size
    assert qkv_w.shape == (3 * H, K)

    # one-time host-side weight prep (outside the kernels): split + transpose
    wq_t = jnp.transpose(qkv_w[:H])                  # (K, H)
    wk_t = jnp.transpose(qkv_w[H:2 * H])
    wv_t = jnp.transpose(qkv_w[2 * H:])
    bq = qkv_b[:H].reshape(1, H)
    bk = qkv_b[H:2 * H].reshape(1, H)
    bv = qkv_b[2 * H:].reshape(1, H)

    tm = _choose_tile_m(T, x.dtype, tile_m)
    grid = (T // tm,)

    itx = jnp.dtype(x.dtype).itemsize
    itw = jnp.dtype(qkv_w.dtype).itemsize
    est = (2 * tm * K * itx            # double-buffered activation tile
           + 2 * 3 * K * H * itw       # resident W^T slabs (+buffer margin)
           + 2 * 3 * tm * H * itx      # q/k/v output tiles
           + 3 * tm * H * 4            # f32 matmul results before cast
           + 8 * H * 4)                # biases

    w_spec = pl.BlockSpec((K, H), lambda i: (0, 0))
    b_spec = pl.BlockSpec((1, H), lambda i: (0, 0))
    o_spec = pl.BlockSpec((tm, H), lambda i: (i, 0))

    return pl.pallas_call(
        _qkv_kernel,
        out_shape=(jax.ShapeDtypeStruct((T, H), x.dtype),
                   jax.ShapeDtypeStruct((T, H), x.dtype),
                   jax.ShapeDtypeStruct((T, H), x.dtype)),
        grid_spec=pltpu.PrefetchScalarGridSpec(
            num_scalar_prefetch=0,
            grid=grid,
            in_specs=[
                pl.BlockSpec((tm, K), lambda i: (i, 0)),   # activation tile
                w_spec, w_spec, w_spec,                    # resident weights
                b_spec, b_spec, b_spec,                    # biases
            ],
            out_specs=[o_spec, o_spec, o_spec],
        ),
        compiler_params=pltpu.CompilerParams(
            dimension_semantics=("parallel",),
            vmem_limit_bytes=_vmem_limit_bytes(est),
        ),
    )(x, wq_t, wk_t, wv_t, bq, bk, bv)


# ----------------------------------------------------------------------------
# kernel 2: multi-head bidirectional self-attention
#   grid = (B, S // tq); q/k/v blocks are lane-dense (tq/S, H) slabs, heads are
#   split in-kernel via static lane slices, output stored as one (tq, H) slab.
# ----------------------------------------------------------------------------
def _mha_kernel(q_ref, k_ref, v_ref, o_ref, *, num_heads: int, head_dim: int,
                scale: float):
    outs = []
    for h in range(num_heads):
        lo = h * head_dim
        qh = q_ref[:, lo:lo + head_dim] * scale          # scale folded into q
        kh = k_ref[:, lo:lo + head_dim]
        vh = v_ref[:, lo:lo + head_dim]
        s = jax.lax.dot_general(qh, kh, (((1,), (1,)), ((), ())),
                                preferred_element_type=jnp.float32)  # (tq, S)
        m = jnp.max(s, axis=-1, keepdims=True)
        p = jnp.exp(s - m)                               # f32 softmax math
        l = jnp.sum(p, axis=-1, keepdims=True)
        o = jnp.dot(p.astype(vh.dtype), vh,
                    preferred_element_type=jnp.float32)  # (tq, d)
        inv = pl.reciprocal(l, approx=True)              # EUP slot
        inv = inv * (2.0 - l * inv)                      # one Newton step (cheap, (tq,1))
        outs.append(o * inv)
    # single lane-dense store of the whole (tq, H) tile
    o_ref[...] = jnp.concatenate(outs, axis=-1).astype(o_ref.dtype)


def mha(q, k, v, *, num_heads: int, tile_q: int = 256):
    """q, k, v: [B, S, H] -> [B, S, H] (heads split/merged inside the kernel)."""
    B, S, H = q.shape
    assert H % num_heads == 0
    d = H // num_heads
    scale = float(d) ** -0.5

    tq = _pick_tile(S, tile_q, _sublane_align(q.dtype))
    grid = (B, S // tq)

    it = jnp.dtype(q.dtype).itemsize
    est = (2 * tq * H * it             # q tile
           + 2 * 2 * S * H * it        # k / v slabs (reused across query tiles)
           + 2 * tq * H * it           # output tile
           + 2 * tq * S * 4            # scores + probs (f32)
           + 2 * tq * H * 4)           # f32 head outputs before cast

    q_spec = pl.BlockSpec((None, tq, H), lambda b, qi: (b, qi, 0))
    kv_spec = pl.BlockSpec((None, S, H), lambda b, qi: (b, 0, 0))

    return pl.pallas_call(
        functools.partial(_mha_kernel, num_heads=num_heads, head_dim=d,
                          scale=scale),
        out_shape=jax.ShapeDtypeStruct((B, S, H), q.dtype),
        grid_spec=pltpu.PrefetchScalarGridSpec(
            num_scalar_prefetch=0,
            grid=grid,
            in_specs=[q_spec, kv_spec, kv_spec],
            out_specs=pl.BlockSpec((None, tq, H), lambda b, qi: (b, qi, 0)),
        ),
        compiler_params=pltpu.CompilerParams(
            dimension_semantics=("parallel", "parallel"),
            vmem_limit_bytes=_vmem_limit_bytes(est),
        ),
    )(q, k, v)


# ----------------------------------------------------------------------------
# kernel 3: fused BertSelfOutput  out = LayerNorm(x @ Wt + b + residual)
#   grid = (T // tm,); full-K matmul with resident W^T, LN epilogue in f32.
# ----------------------------------------------------------------------------
def _dense_ln_kernel(x_ref, wt_ref, b_ref, res_ref, g_ref, be_ref, o_ref, *,
                     eps: float):
    z = (jnp.dot(x_ref[...], wt_ref[...], preferred_element_type=jnp.float32)
         + b_ref[...].astype(jnp.float32)
         + res_ref[...].astype(jnp.float32))
    mean = jnp.mean(z, axis=-1, keepdims=True)
    zc = z - mean
    var = jnp.mean(zc * zc, axis=-1, keepdims=True)
    inv = jax.lax.rsqrt(var + eps)
    out = zc * inv * g_ref[...].astype(jnp.float32) + be_ref[...].astype(jnp.float32)
    o_ref[...] = out.astype(o_ref.dtype)


def dense_add_layernorm(x, residual, w, b, gamma, beta, *, eps: float,
                        tile_m: int = 512):
    """x, residual: [T, H]; w: [H, H] (torch layout); b/gamma/beta: [H]."""
    T, K = x.shape
    N, K2 = w.shape
    assert K == K2
    w_t = jnp.transpose(w)                 # one-time transpose outside the kernel
    b2 = b.reshape(1, N)
    g2 = gamma.reshape(1, N)
    be2 = beta.reshape(1, N)

    tm = _choose_tile_m(T, x.dtype, tile_m)
    grid = (T // tm,)

    itx = jnp.dtype(x.dtype).itemsize
    itw = jnp.dtype(w.dtype).itemsize
    est = (2 * tm * K * itx + 2 * K * N * itw + 2 * tm * N * itx  # x, W^T, out
           + 2 * tm * N * itx                                     # residual
           + 2 * tm * N * 4                                       # f32 epilogue
           + 8 * N * 4)

    return pl.pallas_call(
        functools.partial(_dense_ln_kernel, eps=eps),
        out_shape=jax.ShapeDtypeStruct((T, N), x.dtype),
        grid_spec=pltpu.PrefetchScalarGridSpec(
            num_scalar_prefetch=0,
            grid=grid,
            in_specs=[
                pl.BlockSpec((tm, K), lambda i: (i, 0)),   # attention-out tile
                pl.BlockSpec((K, N), lambda i: (0, 0)),    # resident W^T
                pl.BlockSpec((1, N), lambda i: (0, 0)),    # dense bias
                pl.BlockSpec((tm, N), lambda i: (i, 0)),   # residual tile
                pl.BlockSpec((1, N), lambda i: (0, 0)),    # LN gamma
                pl.BlockSpec((1, N), lambda i: (0, 0)),    # LN beta
            ],
            out_specs=pl.BlockSpec((tm, N), lambda i: (i, 0)),
        ),
        compiler_params=pltpu.CompilerParams(
            dimension_semantics=("parallel",),
            vmem_limit_bytes=_vmem_limit_bytes(est),
        ),
    )(x, w_t, b2, residual, g2, be2)


# ----------------------------------------------------------------------------
# full BertAttention forward
# ----------------------------------------------------------------------------
def bert_attention_forward(positions, hidden_states, params, *, num_heads: int,
                           eps: float, tile_m: int = 512, tile_q: int = 256):
    """hidden_states: [B, S, H]; params: dict of torch-layout weights."""
    del positions  # TODO(synk): only used by the optional rotary embedding (None for BERT)
    B, S, H = hidden_states.shape
    assert H % num_heads == 0
    T = B * S
    x = hidden_states.reshape(T, H)

    # QKV projection -> separate q/k/v (no XLA-level split copy)
    q, k, v = qkv_projection(x, params["qkv_w"], params["qkv_b"],
                             hidden_size=H, tile_m=tile_m)

    # [T, H] -> [B, S, H] is a free metadata reshape; heads split in-kernel.
    attn = mha(q.reshape(B, S, H), k.reshape(B, S, H), v.reshape(B, S, H),
               num_heads=num_heads, tile_q=tile_q)

    # BertSelfOutput: dense + residual + LayerNorm (fused)
    out = dense_add_layernorm(attn.reshape(T, H), x, params["out_w"],
                              params["out_b"], params["ln_gamma"],
                              params["ln_beta"], eps=eps, tile_m=tile_m)
    return out.reshape(B, S, H)


# ----------------------------------------------------------------------------
# pure-JAX reference
# ----------------------------------------------------------------------------
def _reference(hidden_states, p, num_heads, eps):
    B, S, H = hidden_states.shape
    d = H // num_heads
    x = hidden_states.reshape(B * S, H)
    qkv = x @ p["qkv_w"].T + p["qkv_b"]
    q, k, v = jnp.split(qkv, [H, 2 * H], axis=-1)

    def heads(t):
        return t.reshape(B, S, num_heads, d).transpose(0, 2, 1, 3)

    qh, kh, vh = heads(q), heads(k), heads(v)
    s = jnp.einsum("bhqd,bhkd->bhqk", qh, kh) * (d ** -0.5)
    pa = jax.nn.softmax(s, axis=-1)
    o = jnp.einsum("bhqk,bhkd->bhqd", pa, vh).transpose(0, 2, 1, 3).reshape(B * S, H)
    y = o @ p["out_w"].T + p["out_b"]
    z = y + x
    mu = jnp.mean(z, axis=-1, keepdims=True)
    var = jnp.mean((z - mu) ** 2, axis=-1, keepdims=True)
    out = (z - mu) * jax.lax.rsqrt(var + eps) * p["ln_gamma"] + p["ln_beta"]
    return out.reshape(B, S, H)


if __name__ == "__main__":
    key = jax.random.PRNGKey(0)
    batch, seq, hidden, num_heads = 2, 8, 32, 4
    eps = 1e-12

    k1, k2, k3, k4, k5 = jax.random.split(key, 5)
    hidden_states = jax.random.normal(k1, (batch, seq, hidden), dtype=jnp.float32)
    positions = jnp.tile(jnp.arange(seq, dtype=jnp.int32)[None, :], (batch, 1))

    params = {
        "qkv_w": jax.random.normal(k2, (3 * hidden, hidden), jnp.float32) * 0.05,
        "qkv_b": jax.random.normal(k3, (3 * hidden,), jnp.float32) * 0.05,
        "out_w": jax.random.normal(k4, (hidden, hidden), jnp.float32) * 0.05,
        "out_b": jax.random.normal(k5, (hidden,), jnp.float32) * 0.05,
        "ln_gamma": jnp.ones((hidden,), jnp.float32),
        "ln_beta": jnp.zeros((hidden,), jnp.float32),
    }

    out = bert_attention_forward(positions, hidden_states, params,
                                 num_heads=num_heads, eps=eps)
    out = jax.block_until_ready(out)

    ref = _reference(hidden_states, params, num_heads, eps)
    assert out.shape == ref.shape
    assert jnp.allclose(out, ref, atol=1e-3, rtol=1e-3), "mismatch vs reference"

    print("KERNEL_OK")
</pallas_src>

<mosaic_0001>
module attributes {stable_mosaic.version = 11 : i64} {
  func.func @_qkv_kernel(%arg0: i32, %arg1: memref<8x32xf32, #tpu.memory_space<vmem>>, %arg2: memref<32x32xf32, #tpu.memory_space<vmem>>, %arg3: memref<32x32xf32, #tpu.memory_space<vmem>>, %arg4: memref<32x32xf32, #tpu.memory_space<vmem>>, %arg5: memref<1x32xf32, #tpu.memory_space<vmem>>, %arg6: memref<1x32xf32, #tpu.memory_space<vmem>>, %arg7: memref<1x32xf32, #tpu.memory_space<vmem>>, %arg8: memref<8x32xf32, #tpu.memory_space<vmem>>, %arg9: memref<8x32xf32, #tpu.memory_space<vmem>>, %arg10: memref<8x32xf32, #tpu.memory_space<vmem>>) attributes {dimension_semantics = [#tpu.dimension_semantics<parallel>], iteration_bounds = array<i64: 2>, scalar_prefetch = 0 : i64, scratch_operands = 0 : i64, tpu.core_type = #tpu.core_type<tc>, window_params = [{transform_indices = @transform_0, window_bounds = array<i64: 8, 32>}, {pipeline_mode = #tpu.pipeline_mode<synchronous>, transform_indices = @transform_1, window_bounds = array<i64: 32, 32>}, {pipeline_mode = #tpu.pipeline_mode<synchronous>, transform_indices = @transform_2, window_bounds = array<i64: 32, 32>}, {pipeline_mode = #tpu.pipeline_mode<synchronous>, transform_indices = @transform_3, window_bounds = array<i64: 32, 32>}, {pipeline_mode = #tpu.pipeline_mode<synchronous>, transform_indices = @transform_4, window_bounds = array<i64: 1, 32>}, {pipeline_mode = #tpu.pipeline_mode<synchronous>, transform_indices = @transform_5, window_bounds = array<i64: 1, 32>}, {pipeline_mode = #tpu.pipeline_mode<synchronous>, transform_indices = @transform_6, window_bounds = array<i64: 1, 32>}, {transform_indices = @transform_7, window_bounds = array<i64: 8, 32>}, {transform_indices = @transform_8, window_bounds = array<i64: 8, 32>}, {transform_indices = @transform_9, window_bounds = array<i64: 8, 32>}]} {
    %c0 = arith.constant 0 : index
    %c0_0 = arith.constant 0 : index
    %0 = vector.load %arg1[%c0, %c0_0] : memref<8x32xf32, #tpu.memory_space<vmem>>, vector<8x32xf32>
    %c0_1 = arith.constant 0 : index
    %c0_2 = arith.constant 0 : index
    %1 = vector.load %arg2[%c0_1, %c0_2] : memref<32x32xf32, #tpu.memory_space<vmem>>, vector<32x32xf32>
    %cst = arith.constant dense<0.000000e+00> : vector<8x32xf32>
    %2 = tpu.matmul %0, %1, %cst {dimension_numbers = #tpu.dot_dimension_numbers<[1], [0], [0], [1], [0, 0, 1, 1], [], []>} : vector<8x32xf32>, vector<32x32xf32>, vector<8x32xf32> -> vector<8x32xf32>
    %c0_3 = arith.constant 0 : index
    %c0_4 = arith.constant 0 : index
    %3 = vector.load %arg5[%c0_3, %c0_4] : memref<1x32xf32, #tpu.memory_space<vmem>>, vector<1x32xf32>
    %4 = vector.broadcast %3 : vector<1x32xf32> to vector<8x32xf32>
    %5 = arith.addf %2, %4 : vector<8x32xf32>
    %c0_5 = arith.constant 0 : index
    %c0_6 = arith.constant 0 : index
    %6 = vector.load %arg8[%c0_5, %c0_6] : memref<8x32xf32, #tpu.memory_space<vmem>>, vector<8x32xf32>
    tpu.vector_store %arg8[%c0_5, %c0_6], %5 {strides = array<i32>} : memref<8x32xf32, #tpu.memory_space<vmem>>, vector<8x32xf32>,
    %c0_7 = arith.constant 0 : index
    %c0_8 = arith.constant 0 : index
    %7 = vector.load %arg3[%c0_7, %c0_8] : memref<32x32xf32, #tpu.memory_space<vmem>>, vector<32x32xf32>
    %cst_9 = arith.constant dense<0.000000e+00> : vector<8x32xf32>
    %8 = tpu.matmul %0, %7, %cst_9 {dimension_numbers = #tpu.dot_dimension_numbers<[1], [0], [0], [1], [0, 0, 1, 1], [], []>} : vector<8x32xf32>, vector<32x32xf32>, vector<8x32xf32> -> vector<8x32xf32>
    %c0_10 = arith.constant 0 : index
    %c0_11 = arith.constant 0 : index
    %9 = vector.load %arg6[%c0_10, %c0_11] : memref<1x32xf32, #tpu.memory_space<vmem>>, vector<1x32xf32>
    %10 = vector.broadcast %9 : vector<1x32xf32> to vector<8x32xf32>
    %11 = arith.addf %8, %10 : vector<8x32xf32>
    %c0_12 = arith.constant 0 : index
    %c0_13 = arith.constant 0 : index
    %12 = vector.load %arg9[%c0_12, %c0_13] : memref<8x32xf32, #tpu.memory_space<vmem>>, vector<8x32xf32>
    tpu.vector_store %arg9[%c0_12, %c0_13], %11 {strides = array<i32>} : memref<8x32xf32, #tpu.memory_space<vmem>>, vector<8x32xf32>,
    %c0_14 = arith.constant 0 : index
    %c0_15 = arith.constant 0 : index
    %13 = vector.load %arg4[%c0_14, %c0_15] : memref<32x32xf32, #tpu.memory_space<vmem>>, vector<32x32xf32>
    %cst_16 = arith.constant dense<0.000000e+00> : vector<8x32xf32>
    %14 = tpu.matmul %0, %13, %cst_16 {dimension_numbers = #tpu.dot_dimension_numbers<[1], [0], [0], [1], [0, 0, 1, 1], [], []>} : vector<8x32xf32>, vector<32x32xf32>, vector<8x32xf32> -> vector<8x32xf32>
    %c0_17 = arith.constant 0 : index
    %c0_18 = arith.constant 0 : index
    %15 = vector.load %arg7[%c0_17, %c0_18] : memref<1x32xf32, #tpu.memory_space<vmem>>, vector<1x32xf32>
    %16 = vector.broadcast %15 : vector<1x32xf32> to vector<8x32xf32>
    %17 = arith.addf %14, %16 : vector<8x32xf32>
    %c0_19 = arith.constant 0 : index
    %c0_20 = arith.constant 0 : index
    %18 = vector.load %arg10[%c0_19, %c0_20] : memref<8x32xf32, #tpu.memory_space<vmem>>, vector<8x32xf32>
    tpu.vector_store %arg10[%c0_19, %c0_20], %17 {strides = array<i32>} : memref<8x32xf32, #tpu.memory_space<vmem>>, vector<8x32xf32>,
    return
  }
  func.func @transform_0(%arg0: i32) -> (i32, i32) {
    %c0_i32 = arith.constant 0 : i32
    %c0_i32_0 = arith.constant 0 : i32
    return %arg0, %c0_i32 : i32, i32
  }
  func.func @transform_1(%arg0: i32) -> (i32, i32) {
    %c0_i32 = arith.constant 0 : i32
    %c0_i32_0 = arith.constant 0 : i32
    %c0_i32_1 = arith.constant 0 : i32
    return %c0_i32, %c0_i32_0 : i32, i32
  }
  func.func @transform_2(%arg0: i32) -> (i32, i32) {
    %c0_i32 = arith.constant 0 : i32
    %c0_i32_0 = arith.constant 0 : i32
    %c0_i32_1 = arith.constant 0 : i32
    return %c0_i32, %c0_i32_0 : i32, i32
  }
  func.func @transform_3(%arg0: i32) -> (i32, i32) {
    %c0_i32 = arith.constant 0 : i32
    %c0_i32_0 = arith.constant 0 : i32
    %c0_i32_1 = arith.constant 0 : i32
    return %c0_i32, %c0_i32_0 : i32, i32
  }
  func.func @transform_4(%arg0: i32) -> (i32, i32) {
    %c0_i32 = arith.constant 0 : i32
    %c0_i32_0 = arith.constant 0 : i32
    %c0_i32_1 = arith.constant 0 : i32
    return %c0_i32, %c0_i32_0 : i32, i32
  }
  func.func @transform_5(%arg0: i32) -> (i32, i32) {
    %c0_i32 = arith.constant 0 : i32
    %c0_i32_0 = arith.constant 0 : i32
    %c0_i32_1 = arith.constant 0 : i32
    return %c0_i32, %c0_i32_0 : i32, i32
  }
  func.func @transform_6(%arg0: i32) -> (i32, i32) {
    %c0_i32 = arith.constant 0 : i32
    %c0_i32_0 = arith.constant 0 : i32
    %c0_i32_1 = arith.constant 0 : i32
    return %c0_i32, %c0_i32_0 : i32, i32
  }
  func.func @transform_7(%arg0: i32) -> (i32, i32) {
    %c0_i32 = arith.constant 0 : i32
    %c0_i32_0 = arith.constant 0 : i32
    return %arg0, %c0_i32 : i32, i32
  }
  func.func @transform_8(%arg0: i32) -> (i32, i32) {
    %c0_i32 = arith.constant 0 : i32
    %c0_i32_0 = arith.constant 0 : i32
    return %arg0, %c0_i32 : i32, i32
  }
  func.func @transform_9(%arg0: i32) -> (i32, i32) {
    %c0_i32 = arith.constant 0 : i32
    %c0_i32_0 = arith.constant 0 : i32
    return %arg0, %c0_i32 : i32, i32
  }
}

</mosaic_0001>

<bundles_post_ra>
// kernel: tpu_custom_call.1
= control target key start
LH: loop header
LB: loop body
LE: loop exit
PB: predicated region body
PF: predicated region fallthrough
CT: control target
= control target key end

     0   :  { %s1726_s0 = inlined_call_operand.hbm [shape: f32[16,32], index: 0, kind: input, shape index: {}]   ;;  %s1727_s1 = inlined_call_operand.hbm [shape: f32[32,32], index: 1, kind: input, shape index: {}]   ;;  %s1728_s2 = inlined_call_operand.hbm [shape: f32[32,32], index: 2, kind: input, shape index: {}]   ;;  %s1729_s3 = inlined_call_operand.hbm [shape: f32[32,32], index: 3, kind: input, shape index: {}]   ;;  %s1730_s4 = inlined_call_operand.vmem [shape: f32[1,32], index: 4, kind: input, shape index: {}]   ;;  %s1731_s5 = inlined_call_operand.vmem [shape: f32[1,32], index: 5, kind: input, shape index: {}]   ;;  %s1732_s6 = inlined_call_operand.vmem [shape: f32[1,32], index: 6, kind: input, shape index: {}]   ;;  %s1733_s7 = inlined_call_operand.hbm [shape: f32[16,32], index: 7, kind: output, shape index: {0}]   ;;  %s1734_s8 = inlined_call_operand.hbm [shape: f32[16,32], index: 8, kind: output, shape index: {1}]   ;;  %s1735_s9 = inlined_call_operand.hbm [shape: f32[16,32], index: 9, kind: output, shape index: {2}]  }
   0x1   :  { %1743 = sst [smem:[#allocation21_spill]] %s1726_s0 }
   0x2   :  { %1744 = sst [smem:[#allocation22_spill]] %s1735_s9 }
   0x3   :  { %15 = vsyncpa [#allocation3], 0 }
   0x4   :  { %17 = vsyncpa [#allocation3 + $0x1], 0 }
   0x5   :  { %18 = vsyncpa [#allocation6], 0 }
   0x6   :  { %19 = vsyncpa [#allocation9], 0 }
   0x7   :  { %20 = vsyncpa [#allocation4], 0 }
   0x8   :  { %22 = vsyncpa [#allocation4 + $0x1], 0 }
   0x9   :  { %23 = vsyncpa [#allocation12], 0 }
   0xa   :  { %25 = vsyncpa [#allocation12 + $0x1], 0  ;;  %s1371_s30 = smov 0   ;;  %s1373_s10 = smov 0  }
   0xb   :  { %s1375_s11 = smov 0   ;;  %s1377_s12 = smov 0  }
   0xc LB: > { %1745 = sst [smem:[#allocation19_spill]] %s1295_s30  ;;  %s1392_s13 = sadd.s32 4294967295, %s1307_s12   ;;  %s1307_s12 = sphi %s1377_s12, %s1772_s12   ;;  %s1303_s11 = sphi %s1375_s11, %s1771_s11   ;;  %s1299_s10 = sphi %s1373_s10, %s1770_s10   ;;  %s1295_s30 = sphi %s1371_s30, %s1769_s30  }
   0xd   : > { %s1737_s14 = sadd.s32 4294967294, %s1307_s12   ;;  %p51_p0 = scmp.ne.s32.totalorder %s1299_s10, %s1295_s30 }
   0xe   : > { %p1736_p1 = scmp.eq.s32.totalorder %s1392_s13, 0  ;;  %p207_p3 = scmp.eq.s32.totalorder %s1737_s14, 1 }
   0xf   : > { %p872_p5 = scmp.ge.s32.totalorder %s1307_s12, 1  ;;  %p266_p7 = scmp.lt.s32.totalorder %s1307_s12, 3 }
  0x10   : > { %p1403_p4 = por %p1736_p1, %p51_p0  ;;  %p1408_p6 = por %p207_p3, %p51_p0 }
  0x11   : > { %p1413_p8 = pnand %p872_p5, %p266_p7  ;;  %s1309_s18 = smov [#allocation5]  }
  0x12   : > { %s1746_s15 = scalar_select %p1403_p4, 1, 0 }
  0x13   : > { %s1747_s16 = scalar_select %p1408_p6, 1, 0 }
  0x14   : > { %s1749_s17 = scalar_select %p1413_p8, 1, 0 }
  0x15   : > { %1748 = sst [smem:[#allocation20_spill]] %s1747_s16  ;;  %s278_s19 = sshll.u32 %s1309_s18, 4  ;;  %s1417_s19 = int_to_ptr.vmem [resolvable:$true] %s278_s19 }
  0x16   : > { %p987_p9 = pneg %p1413_p8  ;;  %s1310_s21 = smov [#allocation7]  }
  0x17   : > { %s291_s22 = sshll.u32 %s1310_s21, 4  ;;  %s1311_s23 = smov [#allocation8]   ;;  %s1428_s22 = int_to_ptr.vmem [resolvable:$true] %s291_s22 }
  0x18   : > { %p1424_p11 = pnand %p987_p9, %p1736_p1  ;;  %s1430_s24 = sshll.u32 %s1311_s23, 4  ;;  %s305_s24 = int_to_ptr.vmem [resolvable:$true] %s1430_s24 }
  0x19   : > { %s1059_s27 = scalar_lea.hbm %s1727_s1, 512 }
  0x1a   : > { %p1060_p12 = scmp.ne.s32.totalorder %s1727_s1, %s1059_s27  ;;  %p1440_p13 = pneg %p1424_p11 }
  0x1b   : > { %p1066_p5 = scmp.lt.u32.totalorder %s1059_s27, %s1727_s1 }
  0x1c   : > { %p1062_p0 = pnand %p1440_p13, %p1060_p12 }
  0x1e   : > { %p1063_p3 = pneg %p1062_p0 }
  0x20   : > { %p1068_p7 = pnand %p1066_p5, %p1063_p3 }
  0x22   : > { %1071 = shalt.err (!%p1068_p7)
}
  0x23   : > { %s1072_s25 = scalar_lea.vmem %s1417_s19, 512  ;;  %p1080_p2 = scmp.lt.s32.totalorder %s1417_s19, %s1417_s19 }
  0x24   : > { %p1073_p9 = scmp.ne.s32.totalorder %s1417_s19, %s1072_s25  ;;  %p1081_p6 = scmp.lt.s32.totalorder %s1072_s25, %s1072_s25 }
  0x26   : > { %p1075_p10 = pnand %p1073_p9, %p1440_p13  ;;  %p1082_p12 = por %p1081_p6, %p1080_p2 }
  0x28   : > { %p1076_p1 = pneg %p1075_p10 }
  0x2a   : > { %p1083_p0 = pnand %p1082_p12, %p1076_p1 }
  0x2c   : > { %1086 = shalt.err (!%p1083_p0)
}
  0x2d   : > { %s1312_s26 = smov 128   ;;  %s1313_s27 = smov 8  }
  0x2e   : > { %990 = dma.hbm_to_vmem [thread:$0]  (!%p1424_p11), %s1727_s1, 512, %s1417_s19, [#allocation6], %s1312_s26, %s1312_s26, %s1313_s27  }
  0x2f   : > { %s1087_s25 = scalar_lea.hbm %s1728_s2, 512 }
  0x30   : > { %p1088_p1 = scmp.ne.s32.totalorder %s1728_s2, %s1087_s25  ;;  %p1094_p10 = scmp.lt.u32.totalorder %s1087_s25, %s1728_s2 }
  0x32   : > { %p1090_p2 = pnand %p1088_p1, %p1440_p13 }
  0x34   : > { %p1091_p6 = pneg %p1090_p2 }
  0x36   : > { %p1096_p3 = pnand %p1094_p10, %p1091_p6 }
  0x38   : > { %1099 = shalt.err (!%p1096_p3)
}
  0x39   : > { %s1100_s19 = scalar_lea.vmem %s1428_s22, 512  ;;  %p1108_p12 = scmp.lt.s32.totalorder %s1428_s22, %s1428_s22 }
  0x3a   : > { %p1101_p5 = scmp.ne.s32.totalorder %s1428_s22, %s1100_s19  ;;  %p1109_p0 = scmp.lt.s32.totalorder %s1100_s19, %s1100_s19 }
  0x3c   : > { %p1103_p7 = pnand %p1101_p5, %p1440_p13  ;;  %p1110_p1 = por %p1109_p0, %p1108_p12 }
  0x3e   : > { %p1104_p9 = pneg %p1103_p7 }
  0x40   : > { %p1111_p2 = pnand %p1110_p1, %p1104_p9 }
  0x42   : > { %1114 = shalt.err (!%p1111_p2)
}
  0x43   : > { %993 = dma.hbm_to_vmem [thread:$0]  (!%p1424_p11), %s1728_s2, 512, %s1428_s22, [#allocation6], %s1312_s26, %s1312_s26, %s1313_s27  }
  0x44   : > { %s1115_s28 = scalar_lea.hbm %s1729_s3, 512 }
  0x45   : > { %p1116_p6 = scmp.ne.s32.totalorder %s1729_s3, %s1115_s28  ;;  %p1122_p5 = scmp.lt.u32.totalorder %s1115_s28, %s1729_s3 }
  0x47   : > { %p1118_p10 = pnand %p1116_p6, %p1440_p13 }
  0x49   : > { %p1119_p3 = pneg %p1118_p10 }
  0x4b   : > { %p1124_p7 = pnand %p1122_p5, %p1119_p3 }
  0x4d   : > { %1127 = shalt.err (!%p1124_p7)
}
  0x4e   : > { %s1128_s19 = scalar_lea.vmem %s305_s24, 512  ;;  %p1136_p1 = scmp.lt.s32.totalorder %s305_s24, %s305_s24 }
  0x4f   : > { %p1129_p9 = scmp.ne.s32.totalorder %s305_s24, %s1128_s19  ;;  %p1137_p2 = scmp.lt.s32.totalorder %s1128_s19, %s1128_s19 }
  0x51   : > { %p1131_p12 = pnand %p1129_p9, %p1440_p13  ;;  %p1138_p4 = por %p1137_p2, %p1136_p1 }
  0x53   : > { %p1132_p0 = pneg %p1131_p12 }
  0x55   : > { %p1139_p8 = pnand %p1138_p4, %p1132_p0 }
  0x57   : > { %1142 = shalt.err (!%p1139_p8)
}
  0x58   : > { %996 = dma.hbm_to_vmem [thread:$0]  (!%p1424_p11), %s1729_s3, 512, %s305_s24, [#allocation9], %s1312_s26, %s1312_s26, %s1313_s27  }
  0x59   : > { %s1513_s18 = sadd.s32 1, %s1307_s12   ;;  %s38_s30 = sadd.s32 1, %s1303_s11 }
  0x5a   : > { %s35_s20 = ssub.s32 %s1307_s12, %s1513_s18  ;;  %p45_p8 = scmp.ne.s32.totalorder %s1303_s11, %s1299_s10 }
  0x5b   : > { %p36_p4 = scmp.eq.s32.totalorder %s35_s20, 0  ;;  %p46_p13 = scmp.eq.s32.totalorder %s1307_s12, 0 }
  0x5c   : > { %p1014_p6 = scmp.lt.s32.totalorder %s1307_s12, 2  ;;  %p1752_p3 = scmp.eq.s32.totalorder %s1392_s13, 1 }
  0x5d   : > { %s1523_s14 = scalar_select %p36_p4, %s1303_s11, %s38_s30  }
  0x5e   : > { %p47_p10 = por %p46_p13, %p45_p8  ;;  %p1527_p5 = por %p1752_p3, %p45_p8 }
  0x5f   : > { %s327_s28 = sand.u32 1, %s1303_s11   ;;  %s878_s29 = sshll.u32 %s1307_s12, 7 }
  0x60   : > { %s877_s24 = sshll.u32 %s327_s28, 3  ;;  %s1754_s0 = sld [smem:[#allocation21_spill]] }
  0x61   : > { %s331_s23 = scalar_lea.vmem [#allocation2], %s877_s24  ;;  %p1538_p11 = pnand %p1014_p6, %p47_p10 }
  0x62   : > { %s338_s25 = sshll.u32 %s331_s23, 4  ;;  %s328_s22 = scalar_lea.sflag [#allocation3], %s327_s28  ;;  %s1542_s25 = int_to_ptr.vmem [resolvable:$true] %s338_s25 }
  0x63   : > { %p1145_p9 = pneg %p1538_p11 }
  0x66   : > { %s1536_s21 = scalar_lea.hbm %s1754_s0, %s878_s29  ;;  %s1148_s29 = scalar_lea.hbm %s1754_s0, 256 }
  0x67   : > { %s1143_s9 = scalar_lea.hbm %s1536_s21, 128  ;;  %p1149_p1 = scmp.lt.u32.totalorder %s1536_s21, %s1754_s0 }
  0x68   : > { %p1144_p7 = scmp.ne.s32.totalorder %s1536_s21, %s1143_s9  ;;  %p1150_p2 = scmp.lt.u32.totalorder %s1148_s29, %s1143_s9 }
  0x69   : > { %p1152_p8 = scmp.lt.u32.totalorder %s1143_s9, %s1536_s21 }
  0x6a   : > { %p1146_p12 = pnand %p1145_p9, %p1144_p7  ;;  %p1151_p4 = por %p1150_p2, %p1149_p1 }
  0x6c   : > { %p1147_p0 = pneg %p1146_p12  ;;  %p1153_p13 = por %p1152_p8, %p1151_p4 }
  0x6e   : > { %p1154_p6 = pnand %p1153_p13, %p1147_p0 }
  0x70   : > { %1157 = shalt.err (!%p1154_p6)
}
  0x71   : > { %s1158_s28 = scalar_lea.vmem %s1542_s25, 128  ;;  %s1314_s27 = smov [#allocation2]  }
  0x72   : > { %p1159_p10 = scmp.ne.s32.totalorder %s1542_s25, %s1158_s28  ;;  %s1163_s23 = sshll.u32 %s1314_s27, 4  ;;  %s1164_s23 = int_to_ptr.vmem [resolvable:$false] %s1163_s23 }
  0x73   : > { %s1165_s20 = scalar_lea.vmem %s1164_s23, 256  ;;  %p1166_p12 = scmp.lt.s32.totalorder %s1542_s25, %s1164_s23 }
  0x74   : > { %p1161_p3 = pnand %p1159_p10, %p1145_p9  ;;  %p1167_p1 = scmp.lt.s32.totalorder %s1165_s20, %s1158_s28 }
  0x76   : > { %p1162_p7 = pneg %p1161_p3  ;;  %p1168_p2 = por %p1167_p1, %p1166_p12 }
  0x78   : > { %p1169_p4 = pnand %p1168_p2, %p1162_p7 }
  0x7a   : > { %1172 = shalt.err (!%p1169_p4)
}
  0x7b   : > { %1000 = dma.hbm_to_vmem [thread:$0]  (!%p1538_p11), %s1536_s21, 128, %s1542_s25, %s328_s22  }
  0x7c   : > { %p1756_p0 = scmp.ne.s32.totalorder %s1749_s17, 0 }
  0x7d   : > { %s1572_s9 = sand.u32 (!%p1756_p0), 1, %s1299_s10   ;;  %p1757_p9 = scmp.ne.s32.totalorder (!%p1756_p0), %s1746_s15, 0 }
  0x7e   : > { %347 = sbr.rel (%p1756_p0) target bundleno = 429 (0x1ad), region = 48  ;;  %s1575_s30 = sshll.u32 (!%p1756_p0), %s1572_s9, 3 }
  0x7f   : > { %s350_s29 = scalar_lea.sflag (!%p1756_p0), [#allocation3], %s1572_s9  ;;  %s353_s24 = scalar_lea.vmem (!%p1756_p0), [#allocation2], %s1575_s30 }
  0x85   : > { %1274 = dma.done.wait (%p1757_p9), %s350_s29, 128  }
  0x86   : > { %1276 = vsyncadd (%p1757_p9), %s350_s29, 4294967168  ;;  %p1758_p11 = scmp.eq.s32.totalorder %s1392_s13, 0 }
  0x88   : > { %1278 = dma.done.wait (%p1758_p11), [#allocation6], 1024   ;;  %p1759_p8 = pmov %p1758_p11 }
  0x8a   : > { %1280 = vsyncadd (%p1759_p8), [#allocation6], 4294966272  ;;  %p1760_p13 = pmov %p1759_p8 }
  0x8b   : > { %p1761_p6 = pmov %p1759_p8 }
  0x8c   : > { %1282 = dma.done.wait (%p1760_p13), [#allocation9], 512  }
  0x8d   : > { %1284 = vsyncadd (%p1761_p6), [#allocation9], 4294966784  ;;  %v1315_v0 = vmov 0.0|0.0   ;;  %vm1316_vm0 = vmmov 0   ;;  %v1317_v1 = vmov 0.0   ;;  %v411_v2 = vld [vmem:[#allocation5] sm:$0xff] }
  0x8e   : > { %949 = vmatprep.subr.bf16.mxu0 %v1315_v0  ;;  %955 = vmatprep.subr.bf16.mxu1 %v1315_v0  ;;  %v412_v3 = vld [vmem:[#allocation5 + $0x8] sm:$0xff]  ;;  %v413_v4 = vld [vmem:[#allocation5 + $0x10] sm:$0xff]  ;;  %v414_v6 = vld [vmem:[#allocation5 + $0x18] sm:$0xff]  ;;  %vm422_vm1 = vcmask 261120   ;;  %s1604_s25 = sshll.u32 %s1392_s13, 7  ;;  %s395_s19 = scalar_lea.vmem [#allocation10], %s1575_s30 }
  0x8f   : > { %924 = vmatprep.mubr.msk.f32.mxu0 %vm1316_vm0, %v1317_v1  ;;  %935 = vmatprep.mubr.msk.f32.mxu1 %vm1316_vm0, %v1317_v1  ;;  %v950_v5 = vpack.c.bf16 %v412_v3, %v411_v2  ;;  %v497_v7 = vld [vmem:[#allocation7] sm:$0xff]  ;;  %v498_v8 = vld [vmem:[#allocation7 + $0x8] sm:$0xff]  ;;  %v953_v10 = vpack.c.bf16 %v414_v6, %v413_v4  ;;  %v499_v11 = vld [vmem:[#allocation7 + $0x10] sm:$0xff]  ;;  %s685_s22 = sshll.u32 %s395_s19, 4  ;;  %s402_s27 = scalar_lea.vmem [#allocation11], %s1575_s30  ;;  %s1617_s22 = int_to_ptr.vmem [resolvable:$true] %s685_s22 }
  0x90   : > { %v956_v9 = vpack.c.bf16 %v498_v8, %v497_v7  ;;  %v500_v12 = vld [vmem:[#allocation7 + $0x18] sm:$0xff]  ;;  %v579_v13 = vld [vmem:[#allocation8] sm:$0xff]  ;;  %v580_v14 = vld [vmem:[#allocation8 + $0x8] sm:$0xff]  ;;  %s698_s23 = sshll.u32 %s402_s27, 4  ;;  %s1623_s26 = scalar_lea.hbm %s1734_s8, %s1604_s25  ;;  %s1625_s23 = int_to_ptr.vmem [resolvable:$true] %s698_s23 }
  0x91   : > { %951 = vmatpush3.bf16.msra.mxu0 %v950_v5  ;;  %v959_v15 = vpack.c.bf16 %v500_v12, %v499_v11  ;;  %v410_v16 = vld [vmem:[%s353_s24] sm:$0xff]  ;;  %v962_v17 = vpack.c.bf16 %v580_v14, %v579_v13  ;;  %s1615_s24 = scalar_lea.hbm %s1733_s7, %s1604_s25  ;;  %s662_s28 = scalar_lea.sflag [#allocation4], %s1572_s9 }
  0x92   : > { %952 = vmatprep.subr.bf16.mxu0 %v1315_v0  ;;  %957 = vmatpush3.bf16.msra.mxu1 %v956_v9  ;;  %v581_v18 = vld [vmem:[#allocation8 + $0x10] sm:$0xff]  ;;  %v582_v19 = vld [vmem:[#allocation8 + $0x18] sm:$0xff]  ;;  %s1173_s20 = scalar_lea.vmem %s1617_s22, 128  ;;  %s1318_s29 = smov [#allocation10]  }
  0x93   : > { %958 = vmatprep.subr.bf16.mxu1 %v1315_v0  ;;  %v965_v20 = vpack.c.bf16 %v582_v19, %v581_v18  ;;  %v887_v21 = vld [vmem:[%s1730_s4] ss:$0 sm:$0xff]  ;;  %p1174_p10 = scmp.ne.s32.totalorder %s1617_s22, %s1173_s20  ;;  %s1177_s15 = sshll.u32 %s1318_s29, 4  ;;  %s1178_s15 = int_to_ptr.vmem [resolvable:$false] %s1177_s15 }
  0x94   : > { %v889_v22 = vld [vmem:[%s1731_s5] ss:$0 sm:$0xff]  ;;  %s1179_s0 = scalar_lea.vmem %s1178_s15, 256  ;;  %p1180_p12 = scmp.lt.s32.totalorder %s1617_s22, %s1178_s15 }
  0x95   : > { %954 = vmatpush3.bf16.msra.mxu0 %v953_v10  ;;  %p1175_p3 = pnand %p1174_p10, %p1527_p5  ;;  %p1181_p1 = scmp.lt.s32.totalorder %s1179_s0, %s1173_s20 }
  0x96   : > { %961 = vmatprep.subr.bf16.mxu0 %v1315_v0  ;;  %960 = vmatpush3.bf16.msra.mxu1 %v959_v15 }
  0x97   : > { %p1176_p7 = pneg %p1175_p3  ;;  %p1182_p2 = por %p1181_p1, %p1180_p12 }
  0x98   : > { %925 = vmatmul.mubr.msk.f32.vlgmr.msra.gmra.mrb[0].mxu0 %vm422_vm1, %v410_v16 }
  0x99   : > { %963 = vmatpush3.bf16.msra.mxu0 %v962_v17  ;;  %936 = vmatmul.mubr.msk.f32.vlgmr.msra.gmra.mrb[0].mxu1 %vm422_vm1, %v410_v16  ;;  %p1183_p4 = pnand %p1182_p2, %p1176_p7 }
  0x9a   : > { %964 = vmatprep.subr.bf16.mxu0 %v1315_v0  ;;  %946 = vmatprep.mubr.msk.f32.mxu0 %vm1316_vm0, %v1317_v1 }
  0x9d   : > { %966 = vmatpush3.bf16.msra.mxu0 %v965_v20 }
  0xa0   : > { %947 = vmatmul.mubr.msk.f32.vlgmr.msra.gmra.mrb[2].mxu0 %vm422_vm1, %v410_v16 }
 0x16b   : > { %v492_v23 = vpop.f32.mrb[0].mxu0 }
 0x16c   : > { %v493_v24 = vadd.f32 %v887_v21, %v492_v23  ;;  %v926_v25 = vpop.f32.mrb[1].mxu0  ;;  %v574_v26 = vpop.f32.mrb[0].mxu1 }
 0x16d   : > { %v575_v27 = vadd.f32 %v889_v22, %v574_v26  ;;  %v937_v28 = vpop.f32.mrb[1].mxu1 }
 0x16e   : > { %496 = vst.msk [vmem:[%s395_s19] sm:$0xff] %vm422_vm1, %v493_v24 }
 0x16f   : > { %578 = vst.msk [vmem:[%s402_s27] sm:$0xff] %vm422_vm1, %v575_v27 }
 0x170   : > { %1186 = shalt.err (!%p1183_p4)
}
 0x171   : > { %s1187_s9 = scalar_lea.hbm %s1615_s24, 128  ;;  %s1191_s17 = scalar_lea.hbm %s1733_s7, 256 }
 0x172   : > { %p1188_p0 = scmp.ne.s32.totalorder %s1615_s24, %s1187_s9  ;;  %p1192_p8 = scmp.lt.u32.totalorder %s1615_s24, %s1733_s7 }
 0x173   : > { %p1193_p13 = scmp.lt.u32.totalorder %s1191_s17, %s1187_s9  ;;  %p1195_p10 = scmp.lt.u32.totalorder %s1187_s9, %s1615_s24 }
 0x174   : > { %p1189_p9 = pnand %p1188_p0, %p1527_p5 }
 0x175   : > { %p1194_p6 = por %p1193_p13, %p1192_p8 }
 0x176   : > { %p1190_p11 = pneg %p1189_p9 }
 0x177   : > { %p1196_p3 = por %p1195_p10, %p1194_p6 }
 0x179   : > { %p1197_p7 = pnand %p1196_p3, %p1190_p11 }
 0x17b   : > { %1200 = shalt.err (!%p1197_p7)
}
 0x17c   : > { %981 = dma.vmem_to_hbm [thread:$0]  (%p1527_p5), %s1617_s22, 128, %s1615_s24, %s662_s28  }
 0x17d   : > { %s1762_s0 = sand.u32 1, %s1392_s13   ;;  %s1201_s29 = scalar_lea.vmem %s1625_s23, 128 }
 0x17e   : > { %s1653_s20 = scalar_lea.sflag [#allocation12], %s1762_s0  ;;  %p1202_p12 = scmp.ne.s32.totalorder %s1625_s23, %s1201_s29 }
 0x17f   : > { %s1319_s9 = smov [#allocation11]  }
 0x180   : > { %p1203_p1 = pnand %p1202_p12, %p1527_p5  ;;  %s1205_s19 = sshll.u32 %s1319_s9, 4  ;;  %s1206_s19 = int_to_ptr.vmem [resolvable:$false] %s1205_s19 }
 0x181   : > { %s1207_s27 = scalar_lea.vmem %s1206_s19, 256  ;;  %p1208_p4 = scmp.lt.s32.totalorder %s1625_s23, %s1206_s19 }
 0x182   : > { %p1204_p2 = pneg %p1203_p1  ;;  %p1209_p0 = scmp.lt.s32.totalorder %s1207_s27, %s1201_s29 }
 0x184   : > { %p1210_p9 = por %p1209_p0, %p1208_p4 }
 0x186   : > { %p1211_p11 = pnand %p1210_p9, %p1204_p2 }
 0x188   : > { %1214 = shalt.err (!%p1211_p11)
}
 0x189   : > { %s1215_s13 = scalar_lea.hbm %s1623_s26, 128  ;;  %s1219_s28 = scalar_lea.hbm %s1734_s8, 256 }
 0x18a   : > { %p1216_p8 = scmp.ne.s32.totalorder %s1623_s26, %s1215_s13  ;;  %p1220_p10 = scmp.lt.u32.totalorder %s1623_s26, %s1734_s8 }
 0x18b   : > { %p1221_p3 = scmp.lt.u32.totalorder %s1219_s28, %s1215_s13  ;;  %p1223_p12 = scmp.lt.u32.totalorder %s1215_s13, %s1623_s26 }
 0x18c   : > { %p1217_p13 = pnand %p1216_p8, %p1527_p5 }
 0x18d   : > { %p1222_p7 = por %p1221_p3, %p1220_p10 }
 0x18e   : > { %p1218_p6 = pneg %p1217_p13 }
 0x18f   : > { %p1224_p1 = por %p1223_p12, %p1222_p7 }
 0x191   : > { %p1225_p2 = pnand %p1224_p1, %p1218_p6 }
 0x193   : > { %1228 = shalt.err (!%p1225_p2)
}
 0x194   : > { %982 = dma.vmem_to_hbm [thread:$0]  (%p1527_p5), %s1625_s23, 128, %s1623_s26, %s1653_s20   ;;  %v891_v29 = vld [vmem:[%s1732_s6] ss:$0 sm:$0xff]  ;;  %v656_v30 = vpop.f32.mrb[2].mxu0 }
 0x195   : > { %s409_s29 = scalar_lea.vmem [#allocation13], %s1575_s30  ;;  %v657_v31 = vadd.f32 %v891_v29, %v656_v30  ;;  %v948_v32 = vpop.f32.mrb[3].mxu0  ;;  %s1763_s13 = sld [smem:[#allocation22_spill]] }
 0x196   : > { %s711_s9 = sshll.u32 %s409_s29, 4  ;;  %s1320_s23 = smov [#allocation13]   ;;  %s712_s9 = int_to_ptr.vmem [resolvable:$true] %s711_s9 }
 0x197   : > { %660 = vst.msk [vmem:[%s409_s29] sm:$0xff] %vm422_vm1, %v657_v31  ;;  %s1229_s24 = scalar_lea.vmem %s712_s9, 128  ;;  %s1233_s26 = sshll.u32 %s1320_s23, 4  ;;  %s1234_s26 = int_to_ptr.vmem [resolvable:$false] %s1233_s26 }
 0x198   : > { %p1230_p4 = scmp.ne.s32.totalorder %s712_s9, %s1229_s24  ;;  %s1235_s30 = scalar_lea.vmem %s1234_s26, 256 }
 0x199   : > { %p1236_p11 = scmp.lt.s32.totalorder %s712_s9, %s1234_s26  ;;  %p1237_p8 = scmp.lt.s32.totalorder %s1235_s30, %s1229_s24 }
 0x19a   : > { %p1231_p0 = pnand %p1230_p4, %p1527_p5 }
 0x19b   : > { %s1685_s22 = scalar_lea.hbm %s1763_s13, %s1604_s25  ;;  %p1238_p13 = por %p1237_p8, %p1236_p11 }
 0x19c   : > { %p1232_p9 = pneg %p1231_p0 }
 0x19e   : > { %p1239_p6 = pnand %p1238_p13, %p1232_p9 }
 0x1a0   : > { %1242 = shalt.err (!%p1239_p6)
}
 0x1a1   : > { %s1243_s25 = scalar_lea.hbm %s1685_s22, 128  ;;  %s1247_s21 = scalar_lea.hbm %s1763_s13, 256 }
 0x1a2   : > { %p1244_p10 = scmp.ne.s32.totalorder %s1685_s22, %s1243_s25  ;;  %p1248_p12 = scmp.lt.u32.totalorder %s1685_s22, %s1763_s13 }
 0x1a3   : > { %p1249_p1 = scmp.lt.u32.totalorder %s1247_s21, %s1243_s25  ;;  %p1251_p4 = scmp.lt.u32.totalorder %s1243_s25, %s1685_s22 }
 0x1a4   : > { %p1245_p3 = pnand %p1244_p10, %p1527_p5 }
 0x1a5   : > { %p1250_p2 = por %p1249_p1, %p1248_p12 }
 0x1a6   : > { %p1246_p7 = pneg %p1245_p3 }
 0x1a7   : > { %p1252_p0 = por %p1251_p4, %p1250_p2 }
 0x1a9   : > { %p1253_p9 = pnand %p1252_p0, %p1246_p7 }
 0x1ab   : > { %1256 = shalt.err (!%p1253_p9)
}
 0x1ac   : > { %983 = dma.vmem_to_hbm [thread:$0]  (%p1527_p5), %s712_s9, 128, %s1685_s22, %s1653_s20  }
 0x1ad PF: > { %s1764_s29 = sld [smem:[#allocation19_spill]]  ;;  %s1765_s19 = sld [smem:[#allocation20_spill]] }
 0x1ae   : > { %p1767_p8 = scmp.ge.s32.totalorder %s1307_s12, 2 }
 0x1b3   : > { %s723_s27 = sand.u32 1, %s1764_s29   ;;  %p1766_p11 = scmp.ne.s32.totalorder %s1765_s19, 0 }
 0x1b4   : > { %s724_s24 = scalar_lea.sflag [#allocation4], %s723_s27 }
 0x1b5   : > { %p1002_p13 = pnand %p1767_p8, %p1766_p11 }
 0x1b7   : > { %1286 = dma.done.wait (!%p1002_p13), %s724_s24, 128  }
 0x1b8   : > { %1288 = vsyncadd (!%p1002_p13), %s724_s24, 4294967168  ;;  %s1768_s23 = sadd.s32 4294967294, %s1307_s12  }
 0x1b9   : > { %s732_s26 = sand.u32 1, %s1768_s23  }
 0x1ba   : > { %s733_s30 = scalar_lea.sflag [#allocation12], %s732_s26 }
 0x1bb   : > { %1290 = dma.done.wait (!%p1002_p13), %s733_s30, 256  }
 0x1bc   : > { %1292 = vsyncadd (!%p1002_p13), %s733_s30, 4294967040  ;;  %p28_p5 = scmp.ge.s32.totalorder %s1513_s18, 4   ;;  %s1769_s30 = smov %s1299_s10 }
 0x1bd   : > { %s1770_s10 = smov %s1303_s11  ;;  %s1771_s11 = smov %s1523_s14 }
 0x1be   : > { %s1772_s12 = smov %s1513_s18  ;;  %30 = sbr.rel (!%p28_p5) target bundleno = 12 (0xc), region = 137 }
 0x1c5   :  { %747 = vsyncpa [#allocation3], 1 }
 0x1c6   :  { %749 = vsyncpa [#allocation3 + $0x1], 1 }
 0x1c7   :  { %750 = vsyncpa [#allocation6], 1 }
 0x1c8   :  { %751 = vsyncpa [#allocation9], 1 }
 0x1c9   :  { %752 = vsyncpa [#allocation4], 1 }
 0x1ca   :  { %754 = vsyncpa [#allocation4 + $0x1], 1 }
 0x1cb   :  { %755 = vsyncpa [#allocation12], 1 }
 0x1cc   :  { %757 = vsyncpa [#allocation12 + $0x1], 1 }

</bundles_post_ra>
